<compile_context>
chip_gen: v6e
topology: v6e:2x2x1
jax: 0.10.0
libtpu: 0.0.40
codegen_flags: <defaults>
</compile_context>

<pallas_src>
import jax
import jax.numpy as jnp
import numpy as np
from jax.experimental import pallas as pl
from jax.experimental.pallas import tpu as pltpu


def _cosine_sim_loss_kernel(dist_ref, row_ref, col_ref, out_ref,
                            acc_pos_ref, acc_sq_ref):
    """grid = (row tiles i [parallel], col tiles j [arbitrary/reduction]).

    Accumulates sum(eq * sq) and sum(sq) partials for one row tile into (8,128)
    accumulators; writes the lane-dense (16,128) partial block once per row tile.
    """
    j = pl.program_id(1)

    @pl.when(j == 0)
    def _init():
        acc_pos_ref[...] = jnp.zeros_like(acc_pos_ref)
        acc_sq_ref[...] = jnp.zeros_like(acc_sq_ref)

    tm, tn = dist_ref.shape
    # vreg-friendly chunk height (multiple of 8 sublanes) so intermediates live in vregs.
    chunk = next(c for c in (64, 32, 16, 8) if tm % c == 0)
    n_strips = tn // 128
    n_chunks = tm // chunk
    n_folds = chunk // 8

    col = col_ref[...]                                    # (tm, 1) labels
    acc_pos = acc_pos_ref[...]                            # (8, 128) f32
    acc_sq = acc_sq_ref[...]                              # (8, 128) f32

    for m in range(n_strips):                             # 128-lane strips
        lo = m * 128
        row = row_ref[:, lo:lo + 128]                     # (1, 128) labels
        for c in range(n_chunks):                         # sublane chunks
            r0 = c * chunk
            # Cast happens here; the HBM array stays in its native dtype.
            d = dist_ref[r0:r0 + chunk, lo:lo + 128].astype(jnp.float32)
            eq = row == col[r0:r0 + chunk, :]             # (chunk, 128) bool
            diff = eq.astype(jnp.float32) - d
            sq = diff * diff                              # loss_individual_scores
            pos = jnp.where(eq, sq, 0.0)                  # eq * sq
            # Fold (chunk, 128) -> (8, 128) with aligned slices + VPU adds (no XLU).
            sq_f = sq[0:8, :]
            pos_f = pos[0:8, :]
            for k in range(1, n_folds):
                sq_f = sq_f + sq[k * 8:(k + 1) * 8, :]
                pos_f = pos_f + pos[k * 8:(k + 1) * 8, :]
            acc_sq = acc_sq + sq_f
            acc_pos = acc_pos + pos_f

    acc_pos_ref[...] = acc_pos
    acc_sq_ref[...] = acc_sq

    @pl.when(j == pl.num_programs(1) - 1)
    def _finalize():
        out_ref[0:8, :] = acc_pos_ref[...]
        out_ref[8:16, :] = acc_sq_ref[...]


def _cosine_sim_loss_ref(distance_matrix: jax.Array, intents: jax.Array) -> jax.Array:
    """Pure-JAX reference mirroring the PyTorch module exactly (also the small-N path)."""
    n = intents.shape[0]
    eq = (intents[None, :] == intents[:, None]).astype(jnp.float32)
    sq = (eq - distance_matrix.astype(jnp.float32)) ** 2
    pos_samples = jnp.sum(eq) - n
    neg_samples = jnp.sum(1.0 - eq)
    positive_loss = (jnp.sum(eq * sq) - n) / pos_samples
    negative_loss = jnp.sum((1.0 - eq) * sq) / neg_samples
    return positive_loss + negative_loss


def _pick_tile(n: int, candidates) -> int:
    for c in candidates:
        if n % c == 0:
            return c
    return n


def cosine_sim_loss(distance_matrix: jax.Array, intents: jax.Array,
                    *, block_m: int | None = None, block_n: int | None = None) -> jax.Array:
    """Pallas implementation of CosineSimLoss.forward. Returns a scalar f32."""
    N = distance_matrix.shape[0]
    assert distance_matrix.shape == (N, N)
    assert intents.shape == (N,)

    # Tiny / non-tileable problems: pallas_call launch + per-step overhead dominates;
    # let XLA's fused elementwise+reduce handle it.
    if N < 512 or N % 128 != 0:
        return _cosine_sim_loss_ref(distance_matrix, intents)

    if block_m is None:
        # Cap at N//2 so the "parallel" row axis has >= 2 blocks (v7x megacore split).
        block_m = _pick_tile(N, tuple(c for c in (256, 128, 64, 32, 16, 8) if c <= N // 2))
    if block_n is None:
        block_n = _pick_tile(N, (2048, 1024, 512, 256, 128))
    assert N % block_m == 0 and N % block_n == 0
    assert block_m % 8 == 0 and block_n % 128 == 0

    n_i = N // block_m
    n_j = N // block_n

    if jnp.issubdtype(intents.dtype, jnp.floating):
        labels = intents.astype(jnp.float32)
    else:
        labels = intents.astype(jnp.int32)
    labels_row = labels.reshape(1, N)      # labels along lanes
    labels_col = labels.reshape(N, 1)      # labels along sublanes

    itemsize = jnp.dtype(distance_matrix.dtype).itemsize
    cost = pl.CostEstimate(
        flops=int(7 * N * N),
        transcendentals=0,
        bytes_accessed=int(N * N * itemsize
                           + 2 * N * jnp.dtype(labels.dtype).itemsize
                           + n_i * 16 * 128 * 4),
    )

    partials = pl.pallas_call(
        _cosine_sim_loss_kernel,
        out_shape=jax.ShapeDtypeStruct((n_i, 16, 128), jnp.float32),
        grid_spec=pltpu.PrefetchScalarGridSpec(
            num_scalar_prefetch=0,
            grid=(n_i, n_j),
            in_specs=[
                pl.BlockSpec((block_m, block_n), lambda i, j: (i, j)),
                pl.BlockSpec((1, block_n), lambda i, j: (0, j)),
                pl.BlockSpec((block_m, 1), lambda i, j: (i, 0)),
            ],
            out_specs=pl.BlockSpec((None, 16, 128), lambda i, j: (i, 0, 0)),
            scratch_shapes=[pltpu.VMEM((8, 128), jnp.float32),
                            pltpu.VMEM((8, 128), jnp.float32)],
        ),
        compiler_params=pltpu.CompilerParams(
            # Row-tile axis parallel (megacore splits it; each core owns disjoint output
            # blocks); column axis is the accumulation axis -> arbitrary.
            dimension_semantics=("parallel", "arbitrary"),
            vmem_limit_bytes=48 * 1024 * 1024,
        ),
        cost_estimate=cost,
    )(distance_matrix, labels_row, labels_col)

    # Tiny final reduction + loss formula in plain JAX (all partials are f32).
    p = partials.reshape(n_i, 2, 8, 128)
    sums = jnp.sum(p, axis=(0, 2, 3))
    s_pos, s_sq = sums[0], sums[1]

    # sum(eq) depends only on the labels: sum_c count_c^2, computed in O(N log N).
    sorted_labels = jnp.sort(labels)
    counts = (jnp.searchsorted(sorted_labels, labels, side="right")
              - jnp.searchsorted(sorted_labels, labels, side="left"))
    s_eq = jnp.sum(counts.astype(jnp.float32))

    n_f = jnp.float32(N)
    pos_samples = s_eq - n_f                       # sum(eq) - N
    neg_samples = n_f * n_f - s_eq                 # sum(1 - eq)
    positive_loss = (s_pos - n_f) / pos_samples
    negative_loss = (s_sq - s_pos) / neg_samples   # sum((1-eq)*sq) = sum(sq) - sum(eq*sq)
    return positive_loss + negative_loss


if __name__ == "__main__":
    key = jax.random.PRNGKey(0)
    k1, k2 = jax.random.split(key)

    N = 512  # batch of 512 embeddings / labels (smallest size that exercises the kernel)
    # distance_matrix: cosine-similarity-like matrix in [-1, 1], diagonal = 1
    dm = jax.random.uniform(k1, (N, N), dtype=jnp.float32, minval=-1.0, maxval=1.0)
    dm = (dm + dm.T) / 2.0
    dm = dm.at[jnp.arange(N), jnp.arange(N)].set(1.0)
    # intents: integer class labels with repeats (so pos/neg samples both exist)
    intents = jax.random.randint(k2, (N,), 0, 8, dtype=jnp.int32)

    ref = _cosine_sim_loss_ref(dm, intents)

    # Explicit small tiles -> grid (4, 2): exercises init / accumulate / finalize.
    loss = cosine_sim_loss(dm, intents, block_m=128, block_n=256)
    jax.block_until_ready(loss)
    np.testing.assert_allclose(np.asarray(loss), np.asarray(ref), rtol=1e-4, atol=1e-4)

    # Default tile selection path (block_m capped at N//2 so the parallel axis has >= 2 blocks).
    loss_default = cosine_sim_loss(dm, intents)
    jax.block_until_ready(loss_default)
    np.testing.assert_allclose(np.asarray(loss_default), np.asarray(ref), rtol=1e-4, atol=1e-4)

    # Native-dtype (bf16) input path: no wrapper-side f32 copy, cast happens per chunk.
    dm_bf16 = dm.astype(jnp.bfloat16)
    loss_bf16 = cosine_sim_loss(dm_bf16, intents, block_m=128, block_n=256)
    jax.block_until_ready(loss_bf16)
    ref_bf16 = _cosine_sim_loss_ref(dm_bf16, intents)
    np.testing.assert_allclose(np.asarray(loss_bf16), np.asarray(ref_bf16), rtol=1e-4, atol=1e-4)

    print("KERNEL_OK")
</pallas_src>

<mosaic_0001>
module attributes {stable_mosaic.version = 11 : i64} {
  func.func @_cosine_sim_loss_kernel(%arg0: i32, %arg1: i32, %arg2: memref<128x256xf32, #tpu.memory_space<vmem>>, %arg3: memref<1x256xi32, #tpu.memory_space<vmem>>, %arg4: memref<128x1xi32, #tpu.memory_space<vmem>>, %arg5: memref<1x16x128xf32, #tpu.memory_space<vmem>>, %arg6: memref<8x128xf32, #tpu.memory_space<vmem>>, %arg7: memref<8x128xf32, #tpu.memory_space<vmem>>) attributes {dimension_semantics = [#tpu.dimension_semantics<parallel>, #tpu.dimension_semantics<arbitrary>], iteration_bounds = array<i64: 4, 2>, scalar_prefetch = 0 : i64, scratch_operands = 2 : i64, tpu.core_type = #tpu.core_type<tc>, window_params = [{transform_indices = @transform_0, window_bounds = array<i64: 128, 256>}, {transform_indices = @transform_1, window_bounds = array<i64: 1, 256>}, {transform_indices = @transform_2, window_bounds = array<i64: 128, 1>}, {transform_indices = @transform_3, window_bounds = array<i64: 1, 16, 128>}]} {
    %c0_i32 = arith.constant 0 : i32
    %0 = arith.cmpi eq, %arg1, %c0_i32 : i32
    %1 = arith.extui %0 : i1 to i32
    %c0_i32_0 = arith.constant 0 : i32
    %2 = arith.cmpi ne, %1, %c0_i32_0 : i32
    scf.if %2 {
      %cst_24 = arith.constant 0.000000e+00 : f32
      %185 = vector.broadcast %cst_24 : f32 to vector<8x128xf32>
      %c0_25 = arith.constant 0 : index
      %c0_26 = arith.constant 0 : index
      %186 = vector.load %arg6[%c0_25, %c0_26] : memref<8x128xf32, #tpu.memory_space<vmem>>, vector<8x128xf32>
      tpu.vector_store %arg6[%c0_25, %c0_26], %185 {strides = array<i32>} : memref<8x128xf32, #tpu.memory_space<vmem>>, vector<8x128xf32>,
      %cst_27 = arith.constant 0.000000e+00 : f32
      %187 = vector.broadcast %cst_27 : f32 to vector<8x128xf32>
      %c0_28 = arith.constant 0 : index
      %c0_29 = arith.constant 0 : index
      %188 = vector.load %arg7[%c0_28, %c0_29] : memref<8x128xf32, #tpu.memory_space<vmem>>, vector<8x128xf32>
      tpu.vector_store %arg7[%c0_28, %c0_29], %187 {strides = array<i32>} : memref<8x128xf32, #tpu.memory_space<vmem>>, vector<8x128xf32>,
    } else {
    }
    %c0 = arith.constant 0 : index
    %c0_1 = arith.constant 0 : index
    %3 = vector.load %arg4[%c0, %c0_1] : memref<128x1xi32, #tpu.memory_space<vmem>>, vector<128x1xi32>
    %c0_2 = arith.constant 0 : index
    %c0_3 = arith.constant 0 : index
    %4 = vector.load %arg6[%c0_2, %c0_3] : memref<8x128xf32, #tpu.memory_space<vmem>>, vector<8x128xf32>
    %c0_4 = arith.constant 0 : index
    %c0_5 = arith.constant 0 : index
    %5 = vector.load %arg7[%c0_4, %c0_5] : memref<8x128xf32, #tpu.memory_space<vmem>>, vector<8x128xf32>
    %c0_6 = arith.constant 0 : index
    %c0_7 = arith.constant 0 : index
    %6 = vector.load %arg3[%c0_6, %c0_7] : memref<1x256xi32, #tpu.memory_space<vmem>>, vector<1x128xi32>
    %c0_8 = arith.constant 0 : index
    %c0_9 = arith.constant 0 : index
    %7 = vector.load %arg2[%c0_8, %c0_9] : memref<128x256xf32, #tpu.memory_space<vmem>>, vector<64x128xf32>
    %8 = vector.extract_strided_slice %3 {offsets = [0, 0], sizes = [64, 1], strides = [1, 1]} : vector<128x1xi32> to vector<64x1xi32>
    %9 = vector.broadcast %6 : vector<1x128xi32> to vector<64x128xi32>
    %10 = vector.broadcast %8 : vector<64x1xi32> to vector<64x128xi32>
    %11 = arith.cmpi eq, %9, %10 : vector<64x128xi32>
    %12 = arith.extui %11 : vector<64x128xi1> to vector<64x128xi32>
    %13 = arith.sitofp %12 : vector<64x128xi32> to vector<64x128xf32>
    %14 = arith.subf %13, %7 : vector<64x128xf32>
    %15 = arith.mulf %14, %14 : vector<64x128xf32>
    %cst = arith.constant 0.000000e+00 : f32
    %16 = vector.broadcast %cst : f32 to vector<64x128xf32>
    %17 = arith.select %11, %15, %16 : vector<64x128xi1>, vector<64x128xf32>
    %18 = vector.extract_strided_slice %15 {offsets = [0, 0], sizes = [8, 128], strides = [1, 1]} : vector<64x128xf32> to vector<8x128xf32>
    %19 = vector.extract_strided_slice %17 {offsets = [0, 0], sizes = [8, 128], strides = [1, 1]} : vector<64x128xf32> to vector<8x128xf32>
    %20 = vector.extract_strided_slice %15 {offsets = [8, 0], sizes = [8, 128], strides = [1, 1]} : vector<64x128xf32> to vector<8x128xf32>
    %21 = arith.addf %18, %20 : vector<8x128xf32>
    %22 = vector.extract_strided_slice %17 {offsets = [8, 0], sizes = [8, 128], strides = [1, 1]} : vector<64x128xf32> to vector<8x128xf32>
    %23 = arith.addf %19, %22 : vector<8x128xf32>
    %24 = vector.extract_strided_slice %15 {offsets = [16, 0], sizes = [8, 128], strides = [1, 1]} : vector<64x128xf32> to vector<8x128xf32>
    %25 = arith.addf %21, %24 : vector<8x128xf32>
    %26 = vector.extract_strided_slice %17 {offsets = [16, 0], sizes = [8, 128], strides = [1, 1]} : vector<64x128xf32> to vector<8x128xf32>
    %27 = arith.addf %23, %26 : vector<8x128xf32>
    %28 = vector.extract_strided_slice %15 {offsets = [24, 0], sizes = [8, 128], strides = [1, 1]} : vector<64x128xf32> to vector<8x128xf32>
    %29 = arith.addf %25, %28 : vector<8x128xf32>
    %30 = vector.extract_strided_slice %17 {offsets = [24, 0], sizes = [8, 128], strides = [1, 1]} : vector<64x128xf32> to vector<8x128xf32>
    %31 = arith.addf %27, %30 : vector<8x128xf32>
    %32 = vector.extract_strided_slice %15 {offsets = [32, 0], sizes = [8, 128], strides = [1, 1]} : vector<64x128xf32> to vector<8x128xf32>
    %33 = arith.addf %29, %32 : vector<8x128xf32>
    %34 = vector.extract_strided_slice %17 {offsets = [32, 0], sizes = [8, 128], strides = [1, 1]} : vector<64x128xf32> to vector<8x128xf32>
    %35 = arith.addf %31, %34 : vector<8x128xf32>
    %36 = vector.extract_strided_slice %15 {offsets = [40, 0], sizes = [8, 128], strides = [1, 1]} : vector<64x128xf32> to vector<8x128xf32>
    %37 = arith.addf %33, %36 : vector<8x128xf32>
    %38 = vector.extract_strided_slice %17 {offsets = [40, 0], sizes = [8, 128], strides = [1, 1]} : vector<64x128xf32> to vector<8x128xf32>
    %39 = arith.addf %35, %38 : vector<8x128xf32>
    %40 = vector.extract_strided_slice %15 {offsets = [48, 0], sizes = [8, 128], strides = [1, 1]} : vector<64x128xf32> to vector<8x128xf32>
    %41 = arith.addf %37, %40 : vector<8x128xf32>
    %42 = vector.extract_strided_slice %17 {offsets = [48, 0], sizes = [8, 128], strides = [1, 1]} : vector<64x128xf32> to vector<8x128xf32>
    %43 = arith.addf %39, %42 : vector<8x128xf32>
    %44 = vector.extract_strided_slice %15 {offsets = [56, 0], sizes = [8, 128], strides = [1, 1]} : vector<64x128xf32> to vector<8x128xf32>
    %45 = arith.addf %41, %44 : vector<8x128xf32>
    %46 = vector.extract_strided_slice %17 {offsets = [56, 0], sizes = [8, 128], strides = [1, 1]} : vector<64x128xf32> to vector<8x128xf32>
    %47 = arith.addf %43, %46 : vector<8x128xf32>
    %48 = arith.addf %5, %45 : vector<8x128xf32>
    %49 = arith.addf %4, %47 : vector<8x128xf32>
    %c64 = arith.constant 64 : index
    %c0_10 = arith.constant 0 : index
    %50 = vector.load %arg2[%c64, %c0_10] : memref<128x256xf32, #tpu.memory_space<vmem>>, vector<64x128xf32>
    %51 = vector.extract_strided_slice %3 {offsets = [64, 0], sizes = [64, 1], strides = [1, 1]} : vector<128x1xi32> to vector<64x1xi32>
    %52 = vector.broadcast %6 : vector<1x128xi32> to vector<64x128xi32>
    %53 = vector.broadcast %51 : vector<64x1xi32> to vector<64x128xi32>
    %54 = arith.cmpi eq, %52, %53 : vector<64x128xi32>
    %55 = arith.extui %54 : vector<64x128xi1> to vector<64x128xi32>
    %56 = arith.sitofp %55 : vector<64x128xi32> to vector<64x128xf32>
    %57 = arith.subf %56, %50 : vector<64x128xf32>
    %58 = arith.mulf %57, %57 : vector<64x128xf32>
    %cst_11 = arith.constant 0.000000e+00 : f32
    %59 = vector.broadcast %cst_11 : f32 to vector<64x128xf32>
    %60 = arith.select %54, %58, %59 : vector<64x128xi1>, vector<64x128xf32>
    %61 = vector.extract_strided_slice %58 {offsets = [0, 0], sizes = [8, 128], strides = [1, 1]} : vector<64x128xf32> to vector<8x128xf32>
    %62 = vector.extract_strided_slice %60 {offsets = [0, 0], sizes = [8, 128], strides = [1, 1]} : vector<64x128xf32> to vector<8x128xf32>
    %63 = vector.extract_strided_slice %58 {offsets = [8, 0], sizes = [8, 128], strides = [1, 1]} : vector<64x128xf32> to vector<8x128xf32>
    %64 = arith.addf %61, %63 : vector<8x128xf32>
    %65 = vector.extract_strided_slice %60 {offsets = [8, 0], sizes = [8, 128], strides = [1, 1]} : vector<64x128xf32> to vector<8x128xf32>
    %66 = arith.addf %62, %65 : vector<8x128xf32>
    %67 = vector.extract_strided_slice %58 {offsets = [16, 0], sizes = [8, 128], strides = [1, 1]} : vector<64x128xf32> to vector<8x128xf32>
    %68 = arith.addf %64, %67 : vector<8x128xf32>
    %69 = vector.extract_strided_slice %60 {offsets = [16, 0], sizes = [8, 128], strides = [1, 1]} : vector<64x128xf32> to vector<8x128xf32>
    %70 = arith.addf %66, %69 : vector<8x128xf32>
    %71 = vector.extract_strided_slice %58 {offsets = [24, 0], sizes = [8, 128], strides = [1, 1]} : vector<64x128xf32> to vector<8x128xf32>
    %72 = arith.addf %68, %71 : vector<8x128xf32>
    %73 = vector.extract_strided_slice %60 {offsets = [24, 0], sizes = [8, 128], strides = [1, 1]} : vector<64x128xf32> to vector<8x128xf32>
    %74 = arith.addf %70, %73 : vector<8x128xf32>
    %75 = vector.extract_strided_slice %58 {offsets = [32, 0], sizes = [8, 128], strides = [1, 1]} : vector<64x128xf32> to vector<8x128xf32>
    %76 = arith.addf %72, %75 : vector<8x128xf32>
    %77 = vector.extract_strided_slice %60 {offsets = [32, 0], sizes = [8, 128], strides = [1, 1]} : vector<64x128xf32> to vector<8x128xf32>
    %78 = arith.addf %74, %77 : vector<8x128xf32>
    %79 = vector.extract_strided_slice %58 {offsets = [40, 0], sizes = [8, 128], strides = [1, 1]} : vector<64x128xf32> to vector<8x128xf32>
    %80 = arith.addf %76, %79 : vector<8x128xf32>
    %81 = vector.extract_strided_slice %60 {offsets = [40, 0], sizes = [8, 128], strides = [1, 1]} : vector<64x128xf32> to vector<8x128xf32>
    %82 = arith.addf %78, %81 : vector<8x128xf32>
    %83 = vector.extract_strided_slice %58 {offsets = [48, 0], sizes = [8, 128], strides = [1, 1]} : vector<64x128xf32> to vector<8x128xf32>
    %84 = arith.addf %80, %83 : vector<8x128xf32>
    %85 = vector.extract_strided_slice %60 {offsets = [48, 0], sizes = [8, 128], strides = [1, 1]} : vector<64x128xf32> to vector<8x128xf32>
    %86 = arith.addf %82, %85 : vector<8x128xf32>
    %87 = vector.extract_strided_slice %58 {offsets = [56, 0], sizes = [8, 128], strides = [1, 1]} : vector<64x128xf32> to vector<8x128xf32>
    %88 = arith.addf %84, %87 : vector<8x128xf32>
    %89 = vector.extract_strided_slice %60 {offsets = [56, 0], sizes = [8, 128], strides = [1, 1]} : vector<64x128xf32> to vector<8x128xf32>
    %90 = arith.addf %86, %89 : vector<8x128xf32>
    %91 = arith.addf %48, %88 : vector<8x128xf32>
    %92 = arith.addf %49, %90 : vector<8x128xf32>
    %c0_12 = arith.constant 0 : index
    %c128 = arith.constant 128 : index
    %93 = vector.load %arg3[%c0_12, %c128] : memref<1x256xi32, #tpu.memory_space<vmem>>, vector<1x128xi32>
    %c0_13 = arith.constant 0 : index
    %c128_14 = arith.constant 128 : index
    %94 = vector.load %arg2[%c0_13, %c128_14] : memref<128x256xf32, #tpu.memory_space<vmem>>, vector<64x128xf32>
    %95 = vector.extract_strided_slice %3 {offsets = [0, 0], sizes = [64, 1], strides = [1, 1]} : vector<128x1xi32> to vector<64x1xi32>
    %96 = vector.broadcast %93 : vector<1x128xi32> to vector<64x128xi32>
    %97 = vector.broadcast %95 : vector<64x1xi32> to vector<64x128xi32>
    %98 = arith.cmpi eq, %96, %97 : vector<64x128xi32>
    %99 = arith.extui %98 : vector<64x128xi1> to vector<64x128xi32>
    %100 = arith.sitofp %99 : vector<64x128xi32> to vector<64x128xf32>
    %101 = arith.subf %100, %94 : vector<64x128xf32>
    %102 = arith.mulf %101, %101 : vector<64x128xf32>
    %cst_15 = arith.constant 0.000000e+00 : f32
    %103 = vector.broadcast %cst_15 : f32 to vector<64x128xf32>
    %104 = arith.select %98, %102, %103 : vector<64x128xi1>, vector<64x128xf32>
    %105 = vector.extract_strided_slice %102 {offsets = [0, 0], sizes = [8, 128], strides = [1, 1]} : vector<64x128xf32> to vector<8x128xf32>
    %106 = vector.extract_strided_slice %104 {offsets = [0, 0], sizes = [8, 128], strides = [1, 1]} : vector<64x128xf32> to vector<8x128xf32>
    %107 = vector.extract_strided_slice %102 {offsets = [8, 0], sizes = [8, 128], strides = [1, 1]} : vector<64x128xf32> to vector<8x128xf32>
    %108 = arith.addf %105, %107 : vector<8x128xf32>
    %109 = vector.extract_strided_slice %104 {offsets = [8, 0], sizes = [8, 128], strides = [1, 1]} : vector<64x128xf32> to vector<8x128xf32>
    %110 = arith.addf %106, %109 : vector<8x128xf32>
    %111 = vector.extract_strided_slice %102 {offsets = [16, 0], sizes = [8, 128], strides = [1, 1]} : vector<64x128xf32> to vector<8x128xf32>
    %112 = arith.addf %108, %111 : vector<8x128xf32>
    %113 = vector.extract_strided_slice %104 {offsets = [16, 0], sizes = [8, 128], strides = [1, 1]} : vector<64x128xf32> to vector<8x128xf32>
    %114 = arith.addf %110, %113 : vector<8x128xf32>
    %115 = vector.extract_strided_slice %102 {offsets = [24, 0], sizes = [8, 128], strides = [1, 1]} : vector<64x128xf32> to vector<8x128xf32>
    %116 = arith.addf %112, %115 : vector<8x128xf32>
    %117 = vector.extract_strided_slice %104 {offsets = [24, 0], sizes = [8, 128], strides = [1, 1]} : vector<64x128xf32> to vector<8x128xf32>
    %118 = arith.addf %114, %117 : vector<8x128xf32>
    %119 = vector.extract_strided_slice %102 {offsets = [32, 0], sizes = [8, 128], strides = [1, 1]} : vector<64x128xf32> to vector<8x128xf32>
    %120 = arith.addf %116, %119 : vector<8x128xf32>
    %121 = vector.extract_strided_slice %104 {offsets = [32, 0], sizes = [8, 128], strides = [1, 1]} : vector<64x128xf32> to vector<8x128xf32>
    %122 = arith.addf %118, %121 : vector<8x128xf32>
    %123 = vector.extract_strided_slice %102 {offsets = [40, 0], sizes = [8, 128], strides = [1, 1]} : vector<64x128xf32> to vector<8x128xf32>
    %124 = arith.addf %120, %123 : vector<8x128xf32>
    %125 = vector.extract_strided_slice %104 {offsets = [40, 0], sizes = [8, 128], strides = [1, 1]} : vector<64x128xf32> to vector<8x128xf32>
    %126 = arith.addf %122, %125 : vector<8x128xf32>
    %127 = vector.extract_strided_slice %102 {offsets = [48, 0], sizes = [8, 128], strides = [1, 1]} : vector<64x128xf32> to vector<8x128xf32>
    %128 = arith.addf %124, %127 : vector<8x128xf32>
    %129 = vector.extract_strided_slice %104 {offsets = [48, 0], sizes = [8, 128], strides = [1, 1]} : vector<64x128xf32> to vector<8x128xf32>
    %130 = arith.addf %126, %129 : vector<8x128xf32>
    %131 = vector.extract_strided_slice %102 {offsets = [56, 0], sizes = [8, 128], strides = [1, 1]} : vector<64x128xf32> to vector<8x128xf32>
    %132 = arith.addf %128, %131 : vector<8x128xf32>
    %133 = vector.extract_strided_slice %104 {offsets = [56, 0], sizes = [8, 128], strides = [1, 1]} : vector<64x128xf32> to vector<8x128xf32>
    %134 = arith.addf %130, %133 : vector<8x128xf32>
    %135 = arith.addf %91, %132 : vector<8x128xf32>
    %136 = arith.addf %92, %134 : vector<8x128xf32>
    %c64_16 = arith.constant 64 : index
    %c128_17 = arith.constant 128 : index
    %137 = vector.load %arg2[%c64_16, %c128_17] : memref<128x256xf32, #tpu.memory_space<vmem>>, vector<64x128xf32>
    %138 = vector.extract_strided_slice %3 {offsets = [64, 0], sizes = [64, 1], strides = [1, 1]} : vector<128x1xi32> to vector<64x1xi32>
    %139 = vector.broadcast %93 : vector<1x128xi32> to vector<64x128xi32>
    %140 = vector.broadcast %138 : vector<64x1xi32> to vector<64x128xi32>
    %141 = arith.cmpi eq, %139, %140 : vector<64x128xi32>
    %142 = arith.extui %141 : vector<64x128xi1> to vector<64x128xi32>
    %143 = arith.sitofp %142 : vector<64x128xi32> to vector<64x128xf32>
    %144 = arith.subf %143, %137 : vector<64x128xf32>
    %145 = arith.mulf %144, %144 : vector<64x128xf32>
    %cst_18 = arith.constant 0.000000e+00 : f32
    %146 = vector.broadcast %cst_18 : f32 to vector<64x128xf32>
    %147 = arith.select %141, %145, %146 : vector<64x128xi1>, vector<64x128xf32>
    %148 = vector.extract_strided_slice %145 {offsets = [0, 0], sizes = [8, 128], strides = [1, 1]} : vector<64x128xf32> to vector<8x128xf32>
    %149 = vector.extract_strided_slice %147 {offsets = [0, 0], sizes = [8, 128], strides = [1, 1]} : vector<64x128xf32> to vector<8x128xf32>
    %150 = vector.extract_strided_slice %145 {offsets = [8, 0], sizes = [8, 128], strides = [1, 1]} : vector<64x128xf32> to vector<8x128xf32>
    %151 = arith.addf %148, %150 : vector<8x128xf32>
    %152 = vector.extract_strided_slice %147 {offsets = [8, 0], sizes = [8, 128], strides = [1, 1]} : vector<64x128xf32> to vector<8x128xf32>
    %153 = arith.addf %149, %152 : vector<8x128xf32>
    %154 = vector.extract_strided_slice %145 {offsets = [16, 0], sizes = [8, 128], strides = [1, 1]} : vector<64x128xf32> to vector<8x128xf32>
    %155 = arith.addf %151, %154 : vector<8x128xf32>
    %156 = vector.extract_strided_slice %147 {offsets = [16, 0], sizes = [8, 128], strides = [1, 1]} : vector<64x128xf32> to vector<8x128xf32>
    %157 = arith.addf %153, %156 : vector<8x128xf32>
    %158 = vector.extract_strided_slice %145 {offsets = [24, 0], sizes = [8, 128], strides = [1, 1]} : vector<64x128xf32> to vector<8x128xf32>
    %159 = arith.addf %155, %158 : vector<8x128xf32>
    %160 = vector.extract_strided_slice %147 {offsets = [24, 0], sizes = [8, 128], strides = [1, 1]} : vector<64x128xf32> to vector<8x128xf32>
    %161 = arith.addf %157, %160 : vector<8x128xf32>
    %162 = vector.extract_strided_slice %145 {offsets = [32, 0], sizes = [8, 128], strides = [1, 1]} : vector<64x128xf32> to vector<8x128xf32>
    %163 = arith.addf %159, %162 : vector<8x128xf32>
    %164 = vector.extract_strided_slice %147 {offsets = [32, 0], sizes = [8, 128], strides = [1, 1]} : vector<64x128xf32> to vector<8x128xf32>
    %165 = arith.addf %161, %164 : vector<8x128xf32>
    %166 = vector.extract_strided_slice %145 {offsets = [40, 0], sizes = [8, 128], strides = [1, 1]} : vector<64x128xf32> to vector<8x128xf32>
    %167 = arith.addf %163, %166 : vector<8x128xf32>
    %168 = vector.extract_strided_slice %147 {offsets = [40, 0], sizes = [8, 128], strides = [1, 1]} : vector<64x128xf32> to vector<8x128xf32>
    %169 = arith.addf %165, %168 : vector<8x128xf32>
    %170 = vector.extract_strided_slice %145 {offsets = [48, 0], sizes = [8, 128], strides = [1, 1]} : vector<64x128xf32> to vector<8x128xf32>
    %171 = arith.addf %167, %170 : vector<8x128xf32>
    %172 = vector.extract_strided_slice %147 {offsets = [48, 0], sizes = [8, 128], strides = [1, 1]} : vector<64x128xf32> to vector<8x128xf32>
    %173 = arith.addf %169, %172 : vector<8x128xf32>
    %174 = vector.extract_strided_slice %145 {offsets = [56, 0], sizes = [8, 128], strides = [1, 1]} : vector<64x128xf32> to vector<8x128xf32>
    %175 = arith.addf %171, %174 : vector<8x128xf32>
    %176 = vector.extract_strided_slice %147 {offsets = [56, 0], sizes = [8, 128], strides = [1, 1]} : vector<64x128xf32> to vector<8x128xf32>
    %177 = arith.addf %173, %176 : vector<8x128xf32>
    %178 = arith.addf %135, %175 : vector<8x128xf32>
    %179 = arith.addf %136, %177 : vector<8x128xf32>
    %c0_19 = arith.constant 0 : index
    %c0_20 = arith.constant 0 : index
    %180 = vector.load %arg6[%c0_19, %c0_20] : memref<8x128xf32, #tpu.memory_space<vmem>>, vector<8x128xf32>
    tpu.vector_store %arg6[%c0_19, %c0_20], %179 {strides = array<i32>} : memref<8x128xf32, #tpu.memory_space<vmem>>, vector<8x128xf32>,
    %c0_21 = arith.constant 0 : index
    %c0_22 = arith.constant 0 : index
    %181 = vector.load %arg7[%c0_21, %c0_22] : memref<8x128xf32, #tpu.memory_space<vmem>>, vector<8x128xf32>
    tpu.vector_store %arg7[%c0_21, %c0_22], %178 {strides = array<i32>} : memref<8x128xf32, #tpu.memory_space<vmem>>, vector<8x128xf32>,
    %c1_i32 = arith.constant 1 : i32
    %182 = arith.cmpi eq, %arg1, %c1_i32 : i32
    %183 = arith.extui %182 : i1 to i32
    %c0_i32_23 = arith.constant 0 : i32
    %184 = arith.cmpi ne, %183, %c0_i32_23 : i32
    scf.if %184 {
      %c0_24 = arith.constant 0 : index
      %c0_25 = arith.constant 0 : index
      %185 = vector.load %arg6[%c0_24, %c0_25] : memref<8x128xf32, #tpu.memory_space<vmem>>, vector<8x128xf32>
      %c0_26 = arith.constant 0 : index
      %c0_27 = arith.constant 0 : index
      %c0_28 = arith.constant 0 : index
      %186 = vector.load %arg5[%c0_26, %c0_27, %c0_28] : memref<1x16x128xf32, #tpu.memory_space<vmem>>, vector<1x8x128xf32>
      %187 = vector.shape_cast %186 : vector<1x8x128xf32> to vector<8x128xf32>
      %188 = vector.shape_cast %185 : vector<8x128xf32> to vector<1x8x128xf32>
      tpu.vector_store %arg5[%c0_26, %c0_27, %c0_28], %188 {strides = array<i32>} : memref<1x16x128xf32, #tpu.memory_space<vmem>>, vector<1x8x128xf32>,
      %c0_29 = arith.constant 0 : index
      %c0_30 = arith.constant 0 : index
      %189 = vector.load %arg7[%c0_29, %c0_30] : memref<8x128xf32, #tpu.memory_space<vmem>>, vector<8x128xf32>
      %c0_31 = arith.constant 0 : index
      %c8 = arith.constant 8 : index
      %c0_32 = arith.constant 0 : index
      %190 = vector.load %arg5[%c0_31, %c8, %c0_32] : memref<1x16x128xf32, #tpu.memory_space<vmem>>, vector<1x8x128xf32>
      %191 = vector.shape_cast %190 : vector<1x8x128xf32> to vector<8x128xf32>
      %192 = vector.shape_cast %189 : vector<8x128xf32> to vector<1x8x128xf32>
      tpu.vector_store %arg5[%c0_31, %c8, %c0_32], %192 {strides = array<i32>} : memref<1x16x128xf32, #tpu.memory_space<vmem>>, vector<1x8x128xf32>,
    } else {
    }
    return
  }
  func.func @transform_0(%arg0: i32, %arg1: i32) -> (i32, i32) {
    %c0_i32 = arith.constant 0 : i32
    return %arg0, %arg1 : i32, i32
  }
  func.func @transform_1(%arg0: i32, %arg1: i32) -> (i32, i32) {
    %c0_i32 = arith.constant 0 : i32
    %c0_i32_0 = arith.constant 0 : i32
    return %c0_i32, %arg1 : i32, i32
  }
  func.func @transform_2(%arg0: i32, %arg1: i32) -> (i32, i32) {
    %c0_i32 = arith.constant 0 : i32
    %c0_i32_0 = arith.constant 0 : i32
    return %arg0, %c0_i32 : i32, i32
  }
  func.func @transform_3(%arg0: i32, %arg1: i32) -> (i32, i32, i32) {
    %c0_i32 = arith.constant 0 : i32
    %c0_i32_0 = arith.constant 0 : i32
    %c0_i32_1 = arith.constant 0 : i32
    return %arg0, %c0_i32, %c0_i32_0 : i32, i32, i32
  }
}

</mosaic_0001>

<bundles_post_ra>
// kernel: tpu_custom_call.1
= control target key start
LH: loop header
LB: loop body
LE: loop exit
PB: predicated region body
PF: predicated region fallthrough
CT: control target
= control target key end

     0   :  { %8 = vsyncpa [#allocation5], 0  ;;  %s1680_s0 = inlined_call_operand.hbm [shape: f32[512,512], index: 0, kind: input, shape index: {}]   ;;  %s1681_s1 = inlined_call_operand.vmem [shape: s32[1,512], index: 1, kind: input, shape index: {}]   ;;  %s1682_s2 = inlined_call_operand.vmem [shape: s32[512,1], index: 2, kind: input, shape index: {}]   ;;  %s1683_s3 = inlined_call_operand.hbm [shape: f32[4,16,128], index: 3, kind: output, shape index: {}]  }
   0x1   :  { %10 = vsyncpa [#allocation5 + $0x1], 0 }
   0x2   :  { %11 = vsyncpa [#allocation6], 0 }
   0x3   :  { %13 = vsyncpa [#allocation6 + $0x1], 0  ;;  %s1101_s12 = smov 0   ;;  %s1103_s13 = smov 0  }
   0x4   :  { %s1105_s14 = smov 0   ;;  %s1107_s15 = smov 0  }
   0x5   :  { %s1109_s16 = smov 0   ;;  %s1111_s17 = smov 0  }
   0x6   :  { %s1113_s18 = smov 0   ;;  %s1115_s19 = smov 0  }
   0x7   :  { %s1117_s20 = smov 0   ;;  %s1119_s21 = smov 0  }
   0x8   :  { %s1121_s22 = smov 0  }
   0x9 LB: > { %1688 = sst [smem:[#allocation10_spill]] %s1049_s17  ;;  %s751_s23 = sadd.s32 4294967295, %s1069_s22   ;;  %s1069_s22 = sphi %s1121_s22, %s19_s22   ;;  %s1065_s21 = sphi %s1119_s21, %s1710_s21   ;;  %s1061_s20 = sphi %s1117_s20, %s1709_s20   ;;  %s1057_s19 = sphi %s1115_s19, %s1700_s19   ;;  %s1053_s18 = sphi %s1113_s18, %s1708_s18   ;;  %s1049_s17 = sphi %s1111_s17, %s1699_s17   ;;  %s1045_s16 = sphi %s1109_s16, %s1707_s16   ;;  %s1041_s15 = sphi %s1107_s15, %s1706_s15   ;;  %s1037_s14 = sphi %s1105_s14, %s1705_s14   ;;  %s1033_s13 = sphi %s1103_s13, %s1704_s13   ;;  %s1029_s12 = sphi %s1101_s12, %s1703_s12  }
   0xa   : > { %1689 = sst [smem:[#allocation11_spill]] %s1065_s21  ;;  %s752_s24 = sadd.s32 4294967294, %s1069_s22  }
   0xb   : > { %s28_s25 = sadd.s32 1, %s1061_s20  ;;  %s31_s26 = sadd.s32 1, %s1065_s21 }
   0xc   : > { %p29_p0 = scmp.ge.s32.totalorder %s28_s25, 2  ;;  %s40_s27 = sadd.s32 1, %s1049_s17 }
   0xd   : > { %p47_p1 = scmp.ne.s32.totalorder %s1049_s17, %s1045_s16  ;;  %p48_p2 = scmp.eq.s32.totalorder %s1069_s22, 0 }
   0xe   : > { %s1712_s25 = smov (%p29_p0, %s28_s25), 0  ;;  %s1714_s26 = smov (!%p29_p0, %s31_s26), %s1065_s21 }
   0xf   : > { %1690 = sst [smem:[#allocation12_spill]] %s1712_s25  ;;  %s36_s28 = ssub.s32 %s1061_s20, %s1712_s25 }
  0x10   : > { %p1167_p3 = por %p48_p2, %p47_p1  ;;  %p33_p4 = scmp.ge.s32.totalorder %s1714_s26, 4 }
  0x11   : > { %p53_p5 = scmp.ne.s32.totalorder %s1045_s16, %s1041_s15  ;;  %p54_p6 = scmp.eq.s32.totalorder %s751_s23, 0 }
  0x12   : > { %s118_s30 = sadd.s32 1, %s1037_s14  ;;  %s1716_s26 = smov (%p33_p4, %s1714_s26), 0 }
  0x13   : > { %1692 = sst [smem:[#allocation13_spill]] %s1716_s26  ;;  %p1175_p7 = por %p54_p6, %p53_p5 }
  0x14   : > { %p128_p8 = scmp.ne.s32.totalorder %s1037_s14, %s1033_s13  ;;  %s35_s5 = ssub.s32 %s1065_s21, %s1716_s26 }
  0x15   : > { %p129_p9 = scmp.eq.s32.totalorder %s751_s23, 7  ;;  %s37_s6 = sor.u32 %s36_s28, %s35_s5 }
  0x16   : > { %p116_p10 = scmp.eq.s32.totalorder %s35_s5, 0  ;;  %p38_p11 = scmp.eq.s32.totalorder %s37_s6, 0 }
  0x17   : > { %p1183_p12 = por %p129_p9, %p128_p8  ;;  %p134_p13 = scmp.ne.s32.totalorder %s1033_s13, %s1029_s12 }
  0x18   : > { %s1188_s8 = scalar_select %p116_p10, %s1037_s14, %s118_s30  }
  0x19   : > { %s1191_s9 = scalar_select %p38_p11, %s1049_s17, %s40_s27  }
  0x1a   : > { %p135_p0 = scmp.eq.s32.totalorder %s752_s24, 7  ;;  %p821_p1 = scmp.lt.s32.totalorder %s1069_s22, 8 }
  0x1b   : > { %1695 = sst [smem:[#allocation14_spill]] %s1191_s9  ;;  %s155_s11 = sand.u32 1, %s1049_s17  }
  0x1c   : > { %p1196_p2 = por %p135_p0, %p134_p13  ;;  %s755_s15 = sshll.u32 %s155_s11, 8 }
  0x1d   : > { %s757_s23 = sshll.u32 %s1061_s20, 1  ;;  %s807_s28 = sshll.u32 %s1065_s21, 6 }
  0x1e   : > { %s159_s5 = scalar_lea.vmem [#allocation4], %s755_s15  ;;  %s166_s26 = sadd.s32 %s807_s28, %s757_s23 }
  0x1f   : > { %s169_s6 = sshll.u32 %s159_s5, 4  ;;  %s759_s30 = sshll.u32 %s166_s26, 7  ;;  %s170_s6 = int_to_ptr.vmem [resolvable:$true] %s169_s6 }
  0x20   : > { %p1205_p4 = pnand %p821_p1, %p1167_p3  ;;  %s168_s9 = scalar_lea.hbm %s1680_s0, %s759_s30 }
  0x21   : > { %p760_p5 = scmp.ge.s32.totalorder %s1069_s22, 1  ;;  %s156_s17 = scalar_lea.sflag [#allocation5], %s155_s11 }
  0x22   : > { %p923_p6 = pneg %p1205_p4  ;;  %s934_s21 = scalar_lea.vmem %s170_s6, 4096 }
  0x23   : > { %p935_p8 = scmp.ne.s32.totalorder %s170_s6, %s934_s21  ;;  %s1071_s15 = smov [#allocation4]  }
  0x24   : > { %s939_s26 = sshll.u32 %s1071_s15, 4  ;;  %s940_s26 = int_to_ptr.vmem [resolvable:$false] %s939_s26 }
  0x25   : > { %p937_p9 = pnand %p935_p8, %p923_p6  ;;  %s941_s29 = scalar_lea.vmem %s940_s26, 8192 }
  0x26   : > { %p942_p3 = scmp.lt.s32.totalorder %s170_s6, %s940_s26  ;;  %p943_p11 = scmp.lt.s32.totalorder %s941_s29, %s934_s21 }
  0x27   : > { %p938_p10 = pneg %p937_p9 }
  0x28   : > { %p944_p13 = por %p943_p11, %p942_p3 }
  0x2a   : > { %p945_p0 = pnand %p944_p13, %p938_p10 }
  0x2c   : > { %948 = shalt.err (!%p945_p0)
}
  0x2d   : > { %s1072_s25 = smov 512   ;;  %s1073_s11 = smov 256  }
  0x2e   : > { %s1074_s23 = smov 16   ;;  %p194_p1 = scmp.lt.s32.totalorder %s1069_s22, 9 }
  0x2f   : > { %816 = dma.hbm_to_vmem [thread:$0]  (!%p1205_p4), %s168_s9, 4096, %s170_s6, %s156_s17, %s1072_s25, %s1073_s11, %s1074_s23  }
  0x30   : > { %p195_p6 = pnand %p760_p5, %p194_p1 }
  0x31   : > { %s200_s28 = sand.u32 (!%p195_p6), 1, %s1045_s16  }
  0x32   : > { %198 = sbr.rel (%p195_p6) target bundleno = 290 (0x122), region = 32  ;;  %s761_s5 = sshll.u32 (!%p195_p6), %s200_s28, 8 }
  0x33   : > { %s201_s21 = scalar_lea.sflag (!%p195_p6), [#allocation5], %s200_s28  ;;  %s1221_s30 = scalar_lea.vmem (!%p195_p6), [#allocation4], %s761_s5 }
  0x37   : > { %1020 = dma.done.wait (%p1175_p7), %s201_s21, 4096  }
  0x38   : > { %1022 = vsyncadd (%p1175_p7), %s201_s21, 4294963200  ;;  %s233_s17 = sand.u32 1, %s1033_s13   ;;  %s763_s9 = sshll.u32 %s1053_s18, 1 }
  0x39   : > { %s762_s6 = sshll.u32 %s233_s17, 4  ;;  %p239_p4 = scmp.lt.s32.totalorder %s763_s9, 3 }
  0x3a   : > { %s764_s27 = sshll.u32 %s1057_s19, 4  ;;  %s1242_s23 = scalar_lea.vmem [#allocation7], %s762_s6 }
  0x3b   : > { %s1718_s9 = smov (!%p239_p4, %s763_s9), 3  ;;  %p244_p5 = scmp.lt.s32.totalorder %s764_s27, 63 }
  0x3c   : > { %s1235_s26 = scalar_lea.vmem %s1681_s1, %s1718_s9  ;;  %p766_p7 = scmp.ne.s32.totalorder %s1053_s18, 0 }
  0x3d   : > { %s1720_s27 = smov (!%p244_p5, %s764_s27), 63 }
  0x3e   : > { %s765_s4 = sshll.u32 %s1720_s27, 3  ;;  %252 = sbr.rel (%p766_p7) target bundleno = 69 (0x45), region = 40 }
  0x3f   : > { %s1240_s11 = scalar_lea.vmem %s1682_s2, %s765_s4 }
  0x43   : > { %v1075_v0 = vmov 0.0  }
  0x44   : > { %253 = vst [vmem:[#allocation2] sm:$0xff] %v1075_v0  ;;  %254 = vst [vmem:[#allocation3] sm:$0xff] %v1075_v0 }
  0x45 PF: > { %v257_v1 = vld [vmem:[%s1240_s11 + $0x10] sm:$0xff]  ;;  %v255_v2 = vld [vmem:[%s1240_s11] sm:$0xff]  ;;  %v1076_v3 = vmov 0   ;;  %v256_v5 = vld [vmem:[%s1240_s11 + $0x8] sm:$0xff]  ;;  %v1077_v23 = vmov 0.0   ;;  %p801_p8 = scmp.ne.s32.totalorder %s1053_s18, 1 }
  0x46   : > { %920 = vset.pattern.permute.xlu1 %v1076_v3  ;;  %919 = vset.pattern.permute.xlu0 %v1076_v3  ;;  %v263_v4 = vld [vmem:[%s1240_s11 + $0x40] sm:$0xff]  ;;  %v258_v6 = vld [vmem:[%s1240_s11 + $0x18] sm:$0xff]  ;;  %v264_v7 = vld [vmem:[%s1240_s11 + $0x48] sm:$0xff] }
  0x47   : > { %293 = vperm.xlu1 %920, %v257_v1   ;;  %287 = vperm.xlu0 %919, %v255_v2   ;;  %v259_v8 = vld [vmem:[%s1240_s11 + $0x20] sm:$0xff]  ;;  %v265_v9 = vld [vmem:[%s1240_s11 + $0x50] sm:$0xff]  ;;  %v260_v10 = vld [vmem:[%s1240_s11 + $0x28] sm:$0xff] }
  0x48   : > { %v266_v11 = vld [vmem:[%s1240_s11 + $0x58] sm:$0xff]  ;;  %v261_v12 = vld [vmem:[%s1240_s11 + $0x30] sm:$0xff]  ;;  %v267_v13 = vld [vmem:[%s1240_s11 + $0x60] sm:$0xff] }
  0x49   : > { %v262_v14 = vld [vmem:[%s1240_s11 + $0x38] sm:$0xff]  ;;  %v268_v15 = vld [vmem:[%s1240_s11 + $0x68] sm:$0xff]  ;;  %v269_v17 = vld [vmem:[%s1240_s11 + $0x70] sm:$0xff] }
  0x4a   : > { %v270_v16 = vld [vmem:[%s1240_s11 + $0x78] sm:$0xff]  ;;  %v1262_v18 = vld [vmem:[%s1235_s26] ss:$0 sm:$0xff]  ;;  %v1265_v19 = vld [vmem:[%s1235_s26 + $0x1] ss:$0 sm:$0xff] }
  0x4b   : > { %383 = vperm.xlu1 %920, %v263_v4   ;;  %290 = vperm.xlu0 %919, %v256_v5   ;;  %v274_v22 = vld [vmem:[%s1221_s30] sm:$0xff]  ;;  %v473_v30 = vld [vmem:[%s1221_s30 + $0x28] sm:$0xff]  ;;  %v275_v32 = vld [vmem:[%s1221_s30 + $0x10] sm:$0xff] }
  0x4c   : > { %v276_v27 = vld [vmem:[%s1221_s30 + $0x20] sm:$0xff]  ;;  %v472_v33 = vld [vmem:[%s1221_s30 + $0x18] sm:$0xff]  ;;  %v471_v34 = vld [vmem:[%s1221_s30 + $0x8] sm:$0xff] }
  0x4d   : > { %v374_v37 = vld [vmem:[%s1221_s30 + $0x80] sm:$0xff]  ;;  %v547_v50 = vld [vmem:[%s1221_s30 + $0x88] sm:$0xff]  ;;  %v277_v55 = vld [vmem:[%s1221_s30 + $0x30] sm:$0xff] }
  0x4e   : > { %v474_v56 = vld [vmem:[%s1221_s30 + $0x38] sm:$0xff]  ;;  %v375_v62 = vld [vmem:[%s1221_s30 + $0x90] sm:$0xff] }
  0x4f   : > { %296 = vperm.xlu1 %920, %v258_v6   ;;  %386 = vperm.xlu0 %919, %v264_v7   ;;  %v548_v63 = vld [vmem:[%s1221_s30 + $0x98] sm:$0xff] }
  0x53   : > { %299 = vperm.xlu1 %920, %v259_v8   ;;  %389 = vperm.xlu0 %919, %v265_v9  }
  0x57   : > { %302 = vperm.xlu1 %920, %v260_v10   ;;  %392 = vperm.xlu0 %919, %v266_v11  }
  0x5b   : > { %305 = vperm.xlu1 %920, %v261_v12   ;;  %395 = vperm.xlu0 %919, %v267_v13  }
  0x5f   : > { %308 = vperm.xlu1 %920, %v262_v14   ;;  %398 = vperm.xlu0 %919, %v268_v15   ;;  %v278_v15 = vld [vmem:[%s1221_s30 + $0x40] sm:$0xff] }
  0x63   : > { %404 = vperm.xlu1 %920, %v270_v16   ;;  %401 = vperm.xlu0 %919, %v269_v17  }
  0xc2   : > { %v1267_v20 = vpop.permute.xlu1 %293  ;;  %v1269_v21 = vpop.permute.xlu0 %287 }
  0xc3   : > { %vm310_vm0 = vcmp.eq.s32.totalorder %v1262_v18, %v1269_v21  ;;  %vm312_vm1 = vcmp.eq.s32.totalorder %v1262_v18, %v1267_v20  ;;  %vm485_vm2 = vcmp.eq.s32.totalorder %v1265_v19, %v1267_v20  ;;  %vm483_vm3 = vcmp.eq.s32.totalorder %v1265_v19, %v1269_v21 }
  0xc4   : > { %v768_v24 = vsel %vm310_vm0, 1.0, %v1077_v23  ;;  %v770_v28 = vsel %vm312_vm1, 1.0, %v1077_v23  ;;  %v787_v29 = vsel %vm485_vm2, 1.0, %v1077_v23  ;;  %v785_v35 = vsel %vm483_vm3, 1.0, %v1077_v23 }
  0xc5   : > { %v334_v31 = vsub.f32 %v768_v24, %v274_v22  ;;  %v336_v36 = vsub.f32 %v770_v28, %v276_v27  ;;  %v509_v43 = vsub.f32 %v787_v29, %v473_v30  ;;  %v507_v47 = vsub.f32 %v785_v35, %v471_v34 }
  0xc6   : > { %v1284_v25 = vpop.permute.xlu1 %383  ;;  %v291_v26 = vpop.permute.xlu0 %290 }
  0xc7   : > { %vm406_vm4 = vcmp.eq.s32.totalorder %v1262_v18, %v1284_v25  ;;  %vm311_vm5 = vcmp.eq.s32.totalorder %v1262_v18, %v291_v26  ;;  %vm484_vm6 = vcmp.eq.s32.totalorder %v1265_v19, %v291_v26  ;;  %vm555_vm7 = vcmp.eq.s32.totalorder %v1265_v19, %v1284_v25 }
  0xc8   : > { %v776_v38 = vsel %vm406_vm4, 1.0, %v1077_v23  ;;  %v769_v39 = vsel %vm311_vm5, 1.0, %v1077_v23  ;;  %v786_v40 = vsel %vm484_vm6, 1.0, %v1077_v23  ;;  %v342_v46 = vmul.f32 %v334_v31, %v334_v31  ;;  %v475_v31 = vld [vmem:[%s1221_s30 + $0x48] sm:$0xff] }
  0xc9   : > { %v335_v44 = vsub.f32 %v769_v39, %v275_v32  ;;  %v508_v45 = vsub.f32 %v786_v40, %v472_v33  ;;  %v430_v48 = vsub.f32 %v776_v38, %v374_v37  ;;  %v793_v51 = vsel %vm555_vm7, 1.0, %v1077_v23  ;;  %v549_v39 = vld [vmem:[%s1221_s30 + $0xa8] sm:$0xff] }
  0xca   : > { %v1318_v41 = vpop.permute.xlu1 %296  ;;  %v1320_v42 = vpop.permute.xlu0 %386  ;;  %v344_v53 = vmul.f32 %v336_v36, %v336_v36  ;;  %v517_v60 = vmul.f32 %v509_v43, %v509_v43  ;;  %v515_v61 = vmul.f32 %v507_v47, %v507_v47  ;;  %v350_v2 = vsel %vm310_vm0, %v342_v46, 0.0  ;;  %v376_v36 = vld [vmem:[%s1221_s30 + $0xa0] sm:$0xff] }
  0xcb   : > { %vm313_vm8 = vcmp.eq.s32.totalorder %v1262_v18, %v1318_v41  ;;  %vm486_vm9 = vcmp.eq.s32.totalorder %v1265_v19, %v1318_v41  ;;  %v343_v49 = vmul.f32 %v335_v44, %v335_v44  ;;  %vm407_vm10 = vcmp.eq.s32.totalorder %v1262_v18, %v1320_v42 }
  0xcc   : > { %vm556_vm11 = vcmp.eq.s32.totalorder %v1265_v19, %v1320_v42  ;;  %v516_v52 = vmul.f32 %v508_v45, %v508_v45  ;;  %v771_v57 = vsel %vm313_vm8, 1.0, %v1077_v23  ;;  %v788_v58 = vsel %vm486_vm9, 1.0, %v1077_v23 }
  0xcd   : > { %v351_v54 = vsel %vm311_vm5, %v343_v49, 0.0  ;;  %v777_v0 = vsel %vm407_vm10, 1.0, %v1077_v23  ;;  %v794_v1 = vsel %vm556_vm11, 1.0, %v1077_v23  ;;  %v438_v3 = vmul.f32 %v430_v48, %v430_v48 }
  0xce   : > { %v1349_v59 = vpop.permute.xlu1 %299  ;;  %v579_v4 = vsub.f32 %v793_v51, %v547_v50  ;;  %v358_v5 = vadd.f32 %v343_v49, %v342_v46  ;;  %v359_v6 = vadd.f32 %v351_v54, %v350_v2  ;;  %v524_v7 = vsel %vm484_vm6, %v516_v52, 0.0  ;;  %v1385_v20 = vpop.permute.xlu0 %389  ;;  %v279_v50 = vld [vmem:[%s1221_s30 + $0x50] sm:$0xff] }
  0xcf   : > { %v337_v8 = vsub.f32 %v771_v57, %v277_v55  ;;  %v510_v9 = vsub.f32 %v788_v58, %v474_v56  ;;  %v431_v10 = vsub.f32 %v777_v0, %v375_v62  ;;  %v580_v11 = vsub.f32 %v794_v1, %v548_v63 }
  0xd0   : > { %vm314_vm12 = vcmp.eq.s32.totalorder %v1262_v18, %v1349_v59  ;;  %v352_v12 = vsel %vm312_vm1, %v344_v53, 0.0  ;;  %v525_v13 = vsel %vm485_vm2, %v517_v60, 0.0  ;;  %v523_v14 = vsel %vm483_vm3, %v515_v61, 0.0 }
  0xd1   : > { %v772_v16 = vsel %vm314_vm12, 1.0, %v1077_v23  ;;  %v446_v17 = vsel %vm406_vm4, %v438_v3, 0.0  ;;  %v587_v22 = vmul.f32 %v579_v4, %v579_v4  ;;  %v531_v24 = vadd.f32 %v516_v52, %v515_v61 }
  0xd2   : > { %v532_v26 = vadd.f32 %v524_v7, %v523_v14  ;;  %v1387_v27 = vpop.permute.xlu1 %302  ;;  %v345_v21 = vmul.f32 %v337_v8, %v337_v8  ;;  %v360_v28 = vadd.f32 %v358_v5, %v344_v53  ;;  %v361_v29 = vadd.f32 %v359_v6, %v352_v12  ;;  %v1428_v52 = vpop.permute.xlu0 %392  ;;  %v377_v6 = vld [vmem:[%s1221_s30 + $0xb0] sm:$0xff] }
  0xd3   : > { %v518_v30 = vmul.f32 %v510_v9, %v510_v9  ;;  %v439_v32 = vmul.f32 %v431_v10, %v431_v10  ;;  %v588_v33 = vmul.f32 %v580_v11, %v580_v11  ;;  %v338_v34 = vsub.f32 %v772_v16, %v278_v15 }
  0xd4   : > { %vm487_vm13 = vcmp.eq.s32.totalorder %v1265_v19, %v1349_v59  ;;  %vm408_vm14 = vcmp.eq.s32.totalorder %v1262_v18, %v1385_v20  ;;  %vm557_vm15 = vcmp.eq.s32.totalorder %v1265_v19, %v1385_v20  ;;  %vm315_vm0 = vcmp.eq.s32.totalorder %v1262_v18, %v1387_v27 }
  0xd5   : > { %v789_v35 = vsel %vm487_vm13, 1.0, %v1077_v23  ;;  %v533_v37 = vadd.f32 %v531_v24, %v517_v60  ;;  %v778_v40 = vsel %vm408_vm14, 1.0, %v1077_v23  ;;  %v795_v43 = vsel %vm557_vm15, 1.0, %v1077_v23  ;;  %v476_v60 = vld [vmem:[%s1221_s30 + $0x58] sm:$0xff] }
  0xd6   : > { %v511_v38 = vsub.f32 %v789_v35, %v475_v31  ;;  %v353_v44 = vsel %vm313_vm8, %v345_v21, 0.0  ;;  %v526_v45 = vsel %vm486_vm9, %v518_v30, 0.0  ;;  %v534_v46 = vadd.f32 %v532_v26, %v525_v13  ;;  %v1441_v1 = vpop.permute.xlu1 %305  ;;  %v1463_v59 = vpop.permute.xlu0 %395 }
  0xd7   : > { %vm488_vm1 = vcmp.eq.s32.totalorder %v1265_v19, %v1387_v27  ;;  %v447_v47 = vsel %vm407_vm10, %v439_v32, 0.0  ;;  %v346_v48 = vmul.f32 %v338_v34, %v338_v34  ;;  %v432_v49 = vsub.f32 %v778_v40, %v376_v36  ;;  %v378_v34 = vld [vmem:[%s1221_s30 + $0xc0] sm:$0xff] }
  0xd8   : > { %v773_v51 = vsel %vm315_vm0, 1.0, %v1077_v23  ;;  %v595_v41 = vsel %vm555_vm7, %v587_v22, 0.0  ;;  %v596_v53 = vsel %vm556_vm11, %v588_v33, 0.0  ;;  %v519_v54 = vmul.f32 %v511_v38, %v511_v38 }
  0xd9   : > { %v581_v55 = vsub.f32 %v795_v43, %v549_v39  ;;  %v362_v56 = vadd.f32 %v360_v28, %v345_v21  ;;  %v363_v57 = vadd.f32 %v361_v29, %v353_v44  ;;  %v535_v58 = vadd.f32 %v533_v37, %v518_v30  ;;  %v477_v28 = vld [vmem:[%s1221_s30 + $0x68] sm:$0xff] }
  0xda   : > { %v790_v61 = vsel %vm488_vm1, 1.0, %v1077_v23  ;;  %v536_v62 = vadd.f32 %v534_v46, %v526_v45  ;;  %v454_v25 = vadd.f32 %v439_v32, %v438_v3  ;;  %v455_v63 = vadd.f32 %v447_v47, %v446_v17  ;;  %v550_v3 = vld [vmem:[%s1221_s30 + $0xb8] sm:$0xff]  ;;  %v1484_v30 = vpop.permute.xlu1 %308  ;;  %v1501_v43 = vpop.permute.xlu0 %398  ;;  %v551_v47 = vld [vmem:[%s1221_s30 + $0xc8] sm:$0xff] }
  0xdb   : > { %v339_v0 = vsub.f32 %v773_v51, %v279_v50  ;;  %v603_v42 = vadd.f32 %v588_v33, %v587_v22  ;;  %v604_v2 = vadd.f32 %v596_v53, %v595_v41  ;;  %v354_v4 = vsel %vm314_vm12, %v346_v48, 0.0  ;;  %v280_v22 = vld [vmem:[%s1221_s30 + $0x60] sm:$0xff] }
  0xdc   : > { %v440_v5 = vmul.f32 %v432_v49, %v432_v49  ;;  %v527_v7 = vsel %vm487_vm13, %v519_v54, 0.0  ;;  %v589_v8 = vmul.f32 %v581_v55, %v581_v55  ;;  %v512_v9 = vsub.f32 %v790_v61, %v476_v60  ;;  %v281_v49 = vld [vmem:[%s1221_s30 + $0x70] sm:$0xff] }
  0xdd   : > { %vm409_vm2 = vcmp.eq.s32.totalorder %v1262_v18, %v1428_v52  ;;  %vm558_vm3 = vcmp.eq.s32.totalorder %v1265_v19, %v1428_v52  ;;  %vm316_vm4 = vcmp.eq.s32.totalorder %v1262_v18, %v1441_v1  ;;  %vm489_vm5 = vcmp.eq.s32.totalorder %v1265_v19, %v1441_v1 }
  0xde   : > { %v779_v10 = vsel %vm409_vm2, 1.0, %v1077_v23  ;;  %v364_v11 = vadd.f32 %v362_v56, %v346_v48  ;;  %v347_v12 = vmul.f32 %v339_v0, %v339_v0  ;;  %v796_v14 = vsel %vm558_vm3, 1.0, %v1077_v23 }
  0xdf   : > { %v433_v13 = vsub.f32 %v779_v10, %v377_v6  ;;  %v365_v15 = vadd.f32 %v363_v57, %v354_v4  ;;  %v448_v16 = vsel %vm408_vm14, %v440_v5, 0.0  ;;  %v582_v17 = vsub.f32 %v796_v14, %v550_v3  ;;  %v379_v57 = vld [vmem:[%s1221_s30 + $0xd0] sm:$0xff]  ;;  %v552_v6 = vld [vmem:[%s1221_s30 + $0xd8] sm:$0xff] }
  0xe0   : > { %v774_v24 = vsel %vm316_vm4, 1.0, %v1077_v23  ;;  %v537_v26 = vadd.f32 %v535_v58, %v519_v54  ;;  %v538_v21 = vadd.f32 %v536_v62, %v527_v7  ;;  %v791_v29 = vsel %vm489_vm5, 1.0, %v1077_v23  ;;  %v1525_v62 = vpop.permute.xlu1 %404  ;;  %v478_v10 = vld [vmem:[%s1221_s30 + $0x78] sm:$0xff] }
  0xe1   : > { %vm410_vm6 = vcmp.eq.s32.totalorder %v1262_v18, %v1463_v59  ;;  %v597_v31 = vsel %vm557_vm15, %v589_v8, 0.0  ;;  %v520_v32 = vmul.f32 %v512_v9, %v512_v9  ;;  %v441_v33 = vmul.f32 %v433_v13, %v433_v13 }
  0xe2   : > { %v780_v35 = vsel %vm410_vm6, 1.0, %v1077_v23  ;;  %v456_v36 = vadd.f32 %v454_v25, %v440_v5  ;;  %v457_v37 = vadd.f32 %v455_v63, %v448_v16  ;;  %v355_v38 = vsel %vm315_vm0, %v347_v12, 0.0 }
  0xe3   : > { %v340_v39 = vsub.f32 %v774_v24, %v280_v22  ;;  %v590_v40 = vmul.f32 %v582_v17, %v582_v17  ;;  %v513_v20 = vsub.f32 %v791_v29, %v477_v28  ;;  %vm559_vm7 = vcmp.eq.s32.totalorder %v1265_v19, %v1463_v59  ;;  %v381_v22 = vld [vmem:[%s1221_s30 + $0xf0] sm:$0xff]  ;;  %v380_v29 = vld [vmem:[%s1221_s30 + $0xe0] sm:$0xff] }
  0xe4   : > { %vm317_vm8 = vcmp.eq.s32.totalorder %v1262_v18, %v1484_v30  ;;  %v605_v44 = vadd.f32 %v603_v42, %v589_v8  ;;  %v606_v45 = vadd.f32 %v604_v2, %v597_v31  ;;  %v366_v46 = vadd.f32 %v364_v11, %v347_v12  ;;  %v402_v8 = vpop.permute.xlu0 %401 }
  0xe5   : > { %v434_v48 = vsub.f32 %v780_v35, %v378_v34  ;;  %v367_v50 = vadd.f32 %v365_v15, %v355_v38  ;;  %v528_v51 = vsel %vm488_vm1, %v520_v32, 0.0  ;;  %v539_v41 = vadd.f32 %v537_v26, %v520_v32  ;;  %v553_v35 = vld [vmem:[%s1221_s30 + $0xe8] sm:$0xff] }
  0xe6   : > { %v449_v53 = vsel %vm409_vm2, %v441_v33, 0.0  ;;  %v348_v54 = vmul.f32 %v340_v39, %v340_v39  ;;  %v797_v55 = vsel %vm559_vm7, 1.0, %v1077_v23  ;;  %v775_v56 = vsel %vm317_vm8, 1.0, %v1077_v23 }
  0xe7   : > { %vm411_vm9 = vcmp.eq.s32.totalorder %v1262_v18, %v1501_v43  ;;  %v598_v27 = vsel %vm558_vm3, %v590_v40, 0.0  ;;  %v521_v58 = vmul.f32 %v513_v20, %v513_v20  ;;  %v583_v60 = vsub.f32 %v797_v55, %v551_v47 }
  0xe8   : > { %v341_v61 = vsub.f32 %v775_v56, %v281_v49  ;;  %v442_v25 = vmul.f32 %v434_v48, %v434_v48  ;;  %vm490_vm10 = vcmp.eq.s32.totalorder %v1265_v19, %v1484_v30  ;;  %v781_v63 = vsel %vm411_vm9, 1.0, %v1077_v23 }
  0xe9   : > { %vm560_vm11 = vcmp.eq.s32.totalorder %v1265_v19, %v1501_v43  ;;  %v1535_v52 = vadd.f32 %v538_v21, %v528_v51  ;;  %v458_v0 = vadd.f32 %v456_v36, %v441_v33  ;;  %v459_v42 = vadd.f32 %v457_v37, %v449_v53  ;;  %v554_v36 = vld [vmem:[%s1221_s30 + $0xf8] sm:$0xff] }
  0xea   : > { %v435_v2 = vsub.f32 %v781_v63, %v379_v57  ;;  %v607_v4 = vadd.f32 %v605_v44, %v590_v40  ;;  %v608_v5 = vadd.f32 %v606_v45, %v598_v27  ;;  %v798_v7 = vsel %vm560_vm11, 1.0, %v1077_v23  ;;  %v271_v27 = vld [vmem:[#allocation2] sm:$0xff] }
  0xeb   : > { %vm413_vm12 = vcmp.eq.s32.totalorder %v1262_v18, %v1525_v62  ;;  %v356_v9 = vsel %vm316_vm4, %v348_v54, 0.0  ;;  %v591_v3 = vmul.f32 %v583_v60, %v583_v60  ;;  %v349_v11 = vmul.f32 %v341_v61, %v341_v61 }
  0xec   : > { %v792_v12 = vsel %vm490_vm10, 1.0, %v1077_v23  ;;  %v368_v13 = vadd.f32 %v366_v46, %v348_v54  ;;  %v529_v14 = vsel %vm489_vm5, %v521_v58, 0.0  ;;  %v450_v15 = vsel %vm410_vm6, %v442_v25, 0.0  ;;  %v272_v46 = vld [vmem:[#allocation3] sm:$0xff] }
  0xed   : > { %vm562_vm13 = vcmp.eq.s32.totalorder %v1265_v19, %v1525_v62  ;;  %v443_v16 = vmul.f32 %v435_v2, %v435_v2  ;;  %v584_v17 = vsub.f32 %v798_v7, %v552_v6  ;;  %v783_v24 = vsel %vm413_vm12, 1.0, %v1077_v23 }
  0xee   : > { %vm412_vm14 = vcmp.eq.s32.totalorder %v1262_v18, %v402_v8  ;;  %v369_v1 = vadd.f32 %v367_v50, %v356_v9  ;;  %v541_v26 = vadd.f32 %v539_v41, %v521_v58  ;;  %v460_v21 = vadd.f32 %v458_v0, %v442_v25 }
  0xef   : > { %v514_v28 = vsub.f32 %v792_v12, %v478_v10  ;;  %v461_v31 = vadd.f32 %v459_v42, %v450_v15  ;;  %v599_v32 = vsel %vm559_vm7, %v591_v3, 0.0  ;;  %v357_v33 = vsel %vm317_vm8, %v349_v11, 0.0 }
  0xf0   : > { %v592_v34 = vmul.f32 %v584_v17, %v584_v17  ;;  %v437_v37 = vsub.f32 %v783_v24, %v381_v22  ;;  %v800_v38 = vsel %vm562_vm13, 1.0, %v1077_v23  ;;  %v782_v39 = vsel %vm412_vm14, 1.0, %v1077_v23 }
  0xf1   : > { %vm561_vm15 = vcmp.eq.s32.totalorder %v1265_v19, %v402_v8  ;;  %v370_v59 = vadd.f32 %v368_v13, %v349_v11  ;;  %v451_v40 = vsel %vm411_vm9, %v443_v16, 0.0  ;;  %v436_v20 = vsub.f32 %v782_v39, %v380_v29 }
  0xf2   : > { %v799_v44 = vsel %vm561_vm15, 1.0, %v1077_v23  ;;  %v609_v45 = vadd.f32 %v607_v4, %v591_v3  ;;  %v522_v47 = vmul.f32 %v514_v28, %v514_v28  ;;  %v462_v48 = vadd.f32 %v460_v21, %v443_v16 }
  0xf3   : > { %v585_v49 = vsub.f32 %v799_v44, %v553_v35  ;;  %v600_v50 = vsel %vm560_vm11, %v592_v34, 0.0  ;;  %v445_v51 = vmul.f32 %v437_v37, %v437_v37  ;;  %v586_v41 = vsub.f32 %v800_v38, %v554_v36 }
  0xf4   : > { %v444_v53 = vmul.f32 %v436_v20, %v436_v20  ;;  %v610_v54 = vadd.f32 %v608_v5, %v599_v32  ;;  %v371_v55 = vadd.f32 %v369_v1, %v357_v33  ;;  %v463_v56 = vadd.f32 %v461_v31, %v451_v40 }
  0xf5   : > { %v593_v57 = vmul.f32 %v585_v49, %v585_v49  ;;  %v372_v58 = vadd.f32 %v370_v59, %v272_v46  ;;  %v611_v60 = vadd.f32 %v609_v45, %v592_v34  ;;  %v530_v25 = vsel %vm490_vm10, %v522_v47, 0.0 }
  0xf6   : > { %v452_v23 = vsel %vm412_vm14, %v444_v53, 0.0  ;;  %v464_v61 = vadd.f32 %v462_v48, %v444_v53  ;;  %v612_v43 = vadd.f32 %v610_v54, %v600_v50  ;;  %v453_v42 = vsel %vm413_vm12, %v445_v51, 0.0 }
  0xf7   : > { %v465_v63 = vadd.f32 %v463_v56, %v452_v23  ;;  %v601_v0 = vsel %vm561_vm15, %v593_v57, 0.0  ;;  %v594_v2 = vmul.f32 %v586_v41, %v586_v41  ;;  %v613_v5 = vadd.f32 %v611_v60, %v593_v57 }
  0xf8   : > { %v466_v4 = vadd.f32 %v464_v61, %v445_v51  ;;  %v542_v6 = vadd.f32 %v1535_v52, %v529_v14  ;;  %v373_v7 = vadd.f32 %v371_v55, %v271_v27  ;;  %v614_v3 = vadd.f32 %v612_v43, %v601_v0 }
  0xf9   : > { %v467_v9 = vadd.f32 %v465_v63, %v453_v42  ;;  %v543_v10 = vadd.f32 %v541_v26, %v522_v47  ;;  %v602_v8 = vsel %vm562_vm13, %v594_v2, 0.0  ;;  %v615_v15 = vadd.f32 %v613_v5, %v594_v2 }
  0xfa   : > { %v468_v30 = vadd.f32 %v466_v4, %v372_v58  ;;  %v544_v11 = vadd.f32 %v542_v6, %v530_v25  ;;  %v616_v16 = vadd.f32 %v614_v3, %v602_v8 }
  0xfb   : > { %v469_v12 = vadd.f32 %v467_v9, %v373_v7 }
  0xfc   : > { %v545_v13 = vadd.f32 %v543_v10, %v468_v30 }
  0xfd   : > { %v546_v18 = vadd.f32 %v544_v11, %v469_v12  ;;  %624 = sbr.rel (%p801_p8) target bundleno = 266 (0x10a), region = 44 }
  0xfe   : > { %v617_v17 = vadd.f32 %v615_v15, %v545_v13 }
  0xff   : > { %v618_v22 = vadd.f32 %v616_v16, %v546_v18 }
 0x100   : > { %620 = vst [vmem:[#allocation3] sm:$0xff] %v617_v17 }
 0x101   : > { %619 = vst [vmem:[#allocation2] sm:$0xff] %v618_v22 }
 0x107   : > { %v627_v14 = vld [vmem:[#allocation3] sm:$0xff] }
 0x108   : > { %v625_v52 = vld [vmem:[#allocation2] sm:$0xff]  ;;  %628 = vst [vmem:[%s1242_s23 + $0x8] sm:$0xff] %v627_v14 }
 0x109   : > { %626 = vst [vmem:[%s1242_s23] sm:$0xff] %v625_v52 }
 0x10a PF: > { %s808_s28 = sshll.u32 %s1057_s19, 8  ;;  %s643_s9 = sshll.u32 %s1242_s23, 4  ;;  %s1616_s9 = int_to_ptr.vmem [resolvable:$true] %s643_s9 }
 0x10b   : > { %s1613_s30 = scalar_lea.hbm %s1683_s3, %s808_s28  ;;  %s1620_s18 = scalar_lea.sflag [#allocation6], %s233_s17 }
 0x10c   : > { %s949_s6 = scalar_lea.vmem %s1616_s9, 256  ;;  %s1078_s19 = smov [#allocation7]  }
 0x10d   : > { %p950_p9 = scmp.ne.s32.totalorder %s1616_s9, %s949_s6  ;;  %s953_s27 = sshll.u32 %s1078_s19, 4  ;;  %s954_s27 = int_to_ptr.vmem [resolvable:$false] %s953_s27 }
 0x10e   : > { %s955_s24 = scalar_lea.vmem %s954_s27, 512  ;;  %p956_p11 = scmp.lt.s32.totalorder %s1616_s9, %s954_s27 }
 0x10f   : > { %p951_p10 = pnand %p950_p9, %p1183_p12  ;;  %p957_p13 = scmp.lt.s32.totalorder %s955_s24, %s949_s6 }
 0x111   : > { %p952_p3 = pneg %p951_p10  ;;  %p958_p0 = por %p957_p13, %p956_p11 }
 0x113   : > { %p959_p1 = pnand %p958_p0, %p952_p3 }
 0x115   : > { %962 = shalt.err (!%p959_p1)
}
 0x116   : > { %s963_s17 = scalar_lea.hbm %s1613_s30, 256  ;;  %s967_s4 = scalar_lea.hbm %s1683_s3, 1024 }
 0x117   : > { %p964_p6 = scmp.ne.s32.totalorder %s1613_s30, %s963_s17  ;;  %p968_p7 = scmp.lt.s32.totalorder %s1613_s30, %s1683_s3 }
 0x118   : > { %p969_p8 = scmp.lt.s32.totalorder %s967_s4, %s963_s17 }
 0x119   : > { %p965_p4 = pnand %p964_p6, %p1183_p12 }
 0x11a   : > { %p970_p9 = por %p969_p8, %p968_p7 }
 0x11b   : > { %p966_p5 = pneg %p965_p4 }
 0x11d   : > { %p971_p10 = pnand %p970_p9, %p966_p5 }
 0x11f   : > { %974 = shalt.err (!%p971_p10)
}
 0x120   : > { %s1079_s11 = smov 128   ;;  %s1080_s23 = smov 8  }
 0x121   : > { %811 = dma.vmem_to_hbm [thread:$0]  (%p1183_p12), %s1616_s9, 256, %s1613_s30, %s1620_s18, %s1079_s11, %s1079_s11, %s1080_s23  }
 0x122 PF: > { %p822_p3 = scmp.ge.s32.totalorder %s1069_s22, 2  ;;  %s658_s28 = sand.u32 1, %s1029_s12  }
 0x123   : > { %s659_s5 = scalar_lea.sflag [#allocation6], %s658_s28 }
 0x124   : > { %p818_p11 = pnand %p822_p3, %p1196_p2 }
 0x126   : > { %p819_p13 = pneg %p818_p11 }
 0x128   : > { %1024 = dma.done.wait (%p819_p13), %s659_s5, 256  }
 0x129   : > { %1026 = vsyncadd (%p819_p13), %s659_s5, 4294967040  ;;  %s19_s22 = sadd.s32 1, %s1069_s22   ;;  %s1698_s7 = sld [smem:[#allocation10_spill]] }
 0x12a   : > { %p16_p0 = scmp.ge.s32.totalorder %s19_s22, 10   ;;  %s1699_s17 = sld [smem:[#allocation14_spill]] }
 0x12b   : > { %s1700_s19 = sld [smem:[#allocation11_spill]]  ;;  %s1703_s12 = smov %s1033_s13 }
 0x12c   : > { %s1701_s21 = sld [smem:[#allocation12_spill]]  ;;  %s1704_s13 = smov %s1037_s14 }
 0x12d   : > { %s1702_s30 = sld [smem:[#allocation13_spill]]  ;;  %s1705_s14 = smov %s1188_s8 }
 0x12e   : > { %s1706_s15 = smov %s1045_s16  ;;  %s1708_s18 = smov %s1061_s20 }
 0x12f   : > { %s1707_s16 = smov %s1698_s7  ;;  %18 = sbr.rel (!%p16_p0) target bundleno = 9 (0x9), region = 91 }
 0x132   : > { %s1709_s20 = smov %s1701_s21 }
 0x133   : > { %s1710_s21 = smov %s1702_s30 }
 0x134   :  { %664 = vsyncpa [#allocation5], 1 }
 0x135   :  { %666 = vsyncpa [#allocation5 + $0x1], 1 }
 0x136   :  { %667 = vsyncpa [#allocation6], 1 }
 0x137   :  { %669 = vsyncpa [#allocation6 + $0x1], 1 }

</bundles_post_ra>
